<compile_context>
chip_gen: v5e
topology: v5e:2x2
jax: 0.10.0
libtpu: 0.0.40
codegen_flags: <defaults>
</compile_context>

<pallas_src>
import functools

import jax
import jax.numpy as jnp
from jax.experimental import pallas as pl
from jax.experimental.pallas import tpu as pltpu

_LANE = 128
_SUBLANE = 8


def _mn_loss_kernel(basis_ref, pair_ref, out_ref, acc_ref, *,
                    exponent, const, threshold, n_valid, tile_lanes,
                    tiles_per_split, any_ragged):
    """One grid step: all (M pairs x D dims) for one lane-tile of anchors.

    basis_ref: (D, 1, TL)   pair_ref: (D, M, TL)
    out_ref:   (1, 8, 128) f32 per parallel split (written once, last step)
    acc_ref:   (M, TL) f32 scratch accumulator (elementwise, reduced once)
    """
    s = pl.program_id(0)
    i = pl.program_id(1)
    n_i = pl.num_programs(1)

    @pl.when(i == 0)
    def _():
        acc_ref[...] = jnp.zeros_like(acc_ref)

    D = pair_ref.shape[0]

    # Per-D static leading-axis slices: never materialize (D, M, TL) temps.
    sq = None
    for d in range(D):
        diff = pair_ref[d].astype(jnp.float32) - basis_ref[d].astype(jnp.float32)
        term = diff * diff                      # (M, TL)
        sq = term if sq is None else sq + term

    # Trace-time exponent specialization (default exponent==2: no sqrt/pow).
    if exponent == 2:
        d2 = sq + 1.0
    elif isinstance(exponent, int) and exponent > 0 and exponent % 2 == 0:
        d2 = sq ** (exponent // 2) + 1.0
    else:
        d2 = jnp.sqrt(sq) ** exponent + 1.0

    # d2 / (const + d2): EUP approx reciprocal + one Newton step + one mul.
    den = const + d2
    inv = pl.reciprocal(den, approx=True)
    inv = inv * (2.0 - den * inv)               # Newton refinement (~f32 acc.)
    loss = d2 * inv

    if threshold is not None:
        loss = jnp.where(loss > threshold, loss, 1.0)

    if any_ragged:
        offset = (s * tiles_per_split + i) * tile_lanes
        is_ragged = offset + tile_lanes > n_valid

        @pl.when(jnp.logical_not(is_ragged))
        def _():
            acc_ref[...] += loss                # common path: no mask work

        @pl.when(is_ragged)
        def _():
            lane = jax.lax.broadcasted_iota(jnp.int32, loss.shape, 1)
            # SELECT (not multiply): out-of-range lanes hold garbage data.
            acc_ref[...] += jnp.where(lane < (n_valid - offset), loss, 0.0)
    else:
        acc_ref[...] += loss

    @pl.when(i == n_i - 1)
    def _():
        # Single cross-lane reduce per split, lane-dense (8,128) store.
        out_ref[...] = jnp.sum(acc_ref[...]) + jnp.zeros_like(out_ref)


def mn_loss_from_dmn(basis_dmn, pair_dmn, *, weight, threshold=None,
                     exponent=2, const=10000.0, tile_lanes=32768, n_splits=2):
    """MNLoss on data already in (D, M, N) / (D, 1, N) layout (no copies)."""
    D, M, N = pair_dmn.shape
    assert basis_dmn.shape == (D, 1, N)

    # Normalize float integer exponents so 2.0 takes the fast path.
    if isinstance(exponent, float) and float(exponent).is_integer():
        exponent = int(exponent)

    # Lane tile: multiple of 128, never larger than the array's lane dim
    # (ragged last tile handled in-kernel, no padding pass).
    if N < _LANE:
        tl = N
    else:
        tl = min(max(int(tile_lanes) // _LANE, 1) * _LANE, (N // _LANE) * _LANE)
        tl = max(tl, _LANE)
    num_tiles = pl.cdiv(N, tl)

    # Robust megacore split: both v7x TCs always get tiles; extra logical
    # tiles are clamped to the last real block and fully masked in-kernel.
    splits = max(1, min(int(n_splits), num_tiles))
    tiles_per_split = pl.cdiv(num_tiles, splits)
    any_ragged = (N % tl != 0) or (splits * tiles_per_split != num_tiles)

    last_block = num_tiles - 1

    def lane_map(s, i):
        t = s * tiles_per_split + i
        return (0, 0, jnp.minimum(t, last_block))

    kernel = functools.partial(
        _mn_loss_kernel,
        exponent=exponent,
        const=float(const),                       # Python literals only --
        threshold=None if threshold is None else float(threshold),
        n_valid=int(N),                           # no captured jax arrays.
        tile_lanes=int(tl),
        tiles_per_split=int(tiles_per_split),
        any_ragged=bool(any_ragged),
    )

    # Explicit VMEM budget (covers v5e's 16 MiB default scoped VMEM, stays
    # far under v7x's 64 MiB physical VMEM).
    itemsize = jnp.dtype(pair_dmn.dtype).itemsize
    vmem_need = (2 * (D * M * tl + D * tl) * itemsize   # double-buffered inputs
                 + M * tl * 4                           # accumulator scratch
                 + 2 * _SUBLANE * _LANE * 4)            # output block
    vmem_limit = int(min(max(vmem_need + (4 << 20), 16 << 20), 48 << 20))

    partials = pl.pallas_call(
        kernel,
        out_shape=jax.ShapeDtypeStruct((splits, _SUBLANE, _LANE), jnp.float32),
        grid=(splits, tiles_per_split),
        in_specs=[
            pl.BlockSpec((D, 1, tl), lane_map),   # basis
            pl.BlockSpec((D, M, tl), lane_map),   # pairs
        ],
        out_specs=pl.BlockSpec((1, _SUBLANE, _LANE), lambda s, i: (s, 0, 0)),
        scratch_shapes=[pltpu.VMEM((M, tl), jnp.float32)],
        compiler_params=pltpu.CompilerParams(
            dimension_semantics=("parallel", "arbitrary"),
            vmem_limit_bytes=vmem_limit,
        ),
    )(basis_dmn, pair_dmn)

    total = jnp.sum(partials[:, 0, 0])
    # weight * mean_over_N( sum_over_M(loss) ) == weight * total / N
    return jnp.float32(weight) * total / jnp.float32(N)


def mn_loss(basis, pair_components, **kwargs):
    """Pallas implementation of MNLoss.forward.

    basis:           [N, 1, D]
    pair_components: [N, M, D]
    returns: f32 scalar == weight * mean_over_N( sum_over_M(loss) )

    Note: accepting the module's native [N, M, D] layout requires one
    transpose pass here; producers that can emit (D, M, N) directly should
    call mn_loss_from_dmn and skip it.
    """
    N, M, D = pair_components.shape
    assert basis.shape == (N, 1, D)
    pair_t = jnp.transpose(pair_components, (2, 1, 0))   # (D, M, N)
    basis_t = jnp.transpose(basis, (2, 1, 0))            # (D, 1, N)
    return mn_loss_from_dmn(basis_t, pair_t, **kwargs)


def _mn_loss_ref(basis, pair_components, *, weight, threshold=None, exponent=2,
                 const=10000.0):
    """Pure-JAX reference mirroring the PyTorch forward exactly."""
    diff = pair_components - basis
    norm = jnp.linalg.norm(diff, axis=2)
    d2 = norm ** exponent + 1.0
    loss = d2 / (const + d2)
    if threshold is not None:
        loss = jnp.where(loss > threshold, loss, 1.0)
    loss = jnp.sum(loss, axis=1)
    return weight * jnp.mean(loss)


if __name__ == "__main__":
    key = jax.random.PRNGKey(0)
    k1, k2 = jax.random.split(key)

    # PaCMAP-like shapes: N anchors, M mid-near pairs each, D-dim embedding.
    # N is deliberately NOT a multiple of 128 to exercise the ragged tile.
    N, M, D = 1000, 8, 2
    basis = jax.random.normal(k1, (N, 1, D), dtype=jnp.float32)
    pair_components = jax.random.normal(k2, (N, M, D), dtype=jnp.float32)

    weight = 0.5
    const = 10000.0

    # 1) Default module path (threshold=None, exponent=2); small tile so the
    #    ragged-last-tile mask and the 2-way split are exercised.
    out = mn_loss(basis, pair_components, weight=weight, const=const,
                  tile_lanes=256)
    out = jax.block_until_ready(out)
    ref = _mn_loss_ref(basis, pair_components, weight=weight, const=const)
    assert jnp.allclose(out, ref, rtol=1e-4, atol=1e-6), (out, ref)

    # 2) Threshold path with an odd tile count: exercises the clamped,
    #    fully-masked duplicate tile that keeps both v7x cores busy.
    thr = 4e-4
    out_t = mn_loss(basis, pair_components, weight=weight, const=const,
                    threshold=thr, tile_lanes=384)
    out_t = jax.block_until_ready(out_t)
    ref_t = _mn_loss_ref(basis, pair_components, weight=weight, const=const,
                         threshold=thr)
    assert jnp.allclose(out_t, ref_t, rtol=1e-4, atol=1e-6), (out_t, ref_t)

    # 3) Default (large) tile_lanes + non-default float exponent
    #    (exponent normalization + sqrt/pow path).
    out_e = mn_loss(basis, pair_components, weight=weight, const=const,
                    exponent=3.0)
    out_e = jax.block_until_ready(out_e)
    ref_e = _mn_loss_ref(basis, pair_components, weight=weight, const=const,
                         exponent=3)
    assert jnp.allclose(out_e, ref_e, rtol=1e-4, atol=1e-6), (out_e, ref_e)

    print("KERNEL_OK")
</pallas_src>

<mosaic_0001>
module attributes {stable_mosaic.version = 11 : i64} {
  func.func @_mn_loss_kernel(%arg0: i32, %arg1: i32, %arg2: memref<2x1x256xf32, #tpu.memory_space<vmem>>, %arg3: memref<2x8x256xf32, #tpu.memory_space<vmem>>, %arg4: memref<1x8x128xf32, #tpu.memory_space<vmem>>, %arg5: memref<8x256xf32, #tpu.memory_space<vmem>>) attributes {dimension_semantics = [#tpu.dimension_semantics<parallel>, #tpu.dimension_semantics<arbitrary>], iteration_bounds = array<i64: 2, 2>, scalar_prefetch = 0 : i64, scratch_operands = 1 : i64, tpu.core_type = #tpu.core_type<tc>, window_params = [{transform_indices = @transform_0, window_bounds = array<i64: 2, 1, 256>}, {transform_indices = @transform_1, window_bounds = array<i64: 2, 8, 256>}, {transform_indices = @transform_2, window_bounds = array<i64: 1, 8, 128>}]} {
    %c0_i32 = arith.constant 0 : i32
    %0 = arith.cmpi eq, %arg1, %c0_i32 : i32
    %1 = arith.extui %0 : i1 to i32
    %c0_i32_0 = arith.constant 0 : i32
    %2 = arith.cmpi ne, %1, %c0_i32_0 : i32
    scf.if %2 {
      %cst_17 = arith.constant 0.000000e+00 : f32
      %41 = vector.broadcast %cst_17 : f32 to vector<8x256xf32>
      %c0_18 = arith.constant 0 : index
      %c0_19 = arith.constant 0 : index
      %42 = vector.load %arg5[%c0_18, %c0_19] : memref<8x256xf32, #tpu.memory_space<vmem>>, vector<8x256xf32>
      tpu.vector_store %arg5[%c0_18, %c0_19], %41 {strides = array<i32>} : memref<8x256xf32, #tpu.memory_space<vmem>>, vector<8x256xf32>,
    } else {
    }
    %c0 = arith.constant 0 : index
    %c0_1 = arith.constant 0 : index
    %c0_2 = arith.constant 0 : index
    %3 = vector.load %arg3[%c0, %c0_1, %c0_2] : memref<2x8x256xf32, #tpu.memory_space<vmem>>, vector<1x8x256xf32>
    %4 = vector.shape_cast %3 : vector<1x8x256xf32> to vector<8x256xf32>
    %c0_3 = arith.constant 0 : index
    %c0_4 = arith.constant 0 : index
    %c0_5 = arith.constant 0 : index
    %5 = vector.load %arg2[%c0_3, %c0_4, %c0_5] : memref<2x1x256xf32, #tpu.memory_space<vmem>>, vector<1x1x256xf32>
    %6 = vector.shape_cast %5 : vector<1x1x256xf32> to vector<1x256xf32>
    %7 = vector.broadcast %6 : vector<1x256xf32> to vector<8x256xf32>
    %8 = arith.subf %4, %7 : vector<8x256xf32>
    %9 = arith.mulf %8, %8 : vector<8x256xf32>
    %c1 = arith.constant 1 : index
    %c0_6 = arith.constant 0 : index
    %c0_7 = arith.constant 0 : index
    %10 = vector.load %arg3[%c1, %c0_6, %c0_7] : memref<2x8x256xf32, #tpu.memory_space<vmem>>, vector<1x8x256xf32>
    %11 = vector.shape_cast %10 : vector<1x8x256xf32> to vector<8x256xf32>
    %c1_8 = arith.constant 1 : index
    %c0_9 = arith.constant 0 : index
    %c0_10 = arith.constant 0 : index
    %12 = vector.load %arg2[%c1_8, %c0_9, %c0_10] : memref<2x1x256xf32, #tpu.memory_space<vmem>>, vector<1x1x256xf32>
    %13 = vector.shape_cast %12 : vector<1x1x256xf32> to vector<1x256xf32>
    %14 = vector.broadcast %13 : vector<1x256xf32> to vector<8x256xf32>
    %15 = arith.subf %11, %14 : vector<8x256xf32>
    %16 = arith.mulf %15, %15 : vector<8x256xf32>
    %17 = arith.addf %9, %16 : vector<8x256xf32>
    %cst = arith.constant 1.000000e+00 : f32
    %18 = vector.broadcast %cst : f32 to vector<8x256xf32>
    %19 = arith.addf %17, %18 : vector<8x256xf32>
    %cst_11 = arith.constant 1.000000e+04 : f32
    %20 = vector.broadcast %cst_11 : f32 to vector<8x256xf32>
    %21 = arith.addf %20, %19 : vector<8x256xf32>
    %22 = tpu.reciprocal %21 {approx = true} : vector<8x256xf32> -> vector<8x256xf32>
    %23 = arith.mulf %21, %22 : vector<8x256xf32>
    %cst_12 = arith.constant 2.000000e+00 : f32
    %24 = vector.broadcast %cst_12 : f32 to vector<8x256xf32>
    %25 = arith.subf %24, %23 : vector<8x256xf32>
    %26 = arith.mulf %22, %25 : vector<8x256xf32>
    %27 = arith.mulf %19, %26 : vector<8x256xf32>
    %c2_i32 = arith.constant 2 : i32
    %28 = arith.muli %arg0, %c2_i32 : i32
    %29 = arith.addi %28, %arg1 : i32
    %c256_i32 = arith.constant 256 : i32
    %30 = arith.muli %29, %c256_i32 : i32
    %c256_i32_13 = arith.constant 256 : i32
    %31 = arith.addi %30, %c256_i32_13 : i32
    %c1000_i32 = arith.constant 1000 : i32
    %32 = arith.cmpi sgt, %31, %c1000_i32 : i32
    %true = arith.constant true
    %33 = arith.xori %32, %true : i1
    %34 = arith.extui %33 : i1 to i32
    %c0_i32_14 = arith.constant 0 : i32
    %35 = arith.cmpi ne, %34, %c0_i32_14 : i32
    scf.if %35 {
      %c0_17 = arith.constant 0 : index
      %c0_18 = arith.constant 0 : index
      %41 = vector.load %arg5[%c0_17, %c0_18] : memref<8x256xf32, #tpu.memory_space<vmem>>, vector<8x256xf32>
      %42 = arith.addf %41, %27 : vector<8x256xf32>
      %c0_19 = arith.constant 0 : index
      %c0_20 = arith.constant 0 : index
      %43 = vector.load %arg5[%c0_19, %c0_20] : memref<8x256xf32, #tpu.memory_space<vmem>>, vector<8x256xf32>
      tpu.vector_store %arg5[%c0_19, %c0_20], %42 {strides = array<i32>} : memref<8x256xf32, #tpu.memory_space<vmem>>, vector<8x256xf32>,
    } else {
    }
    %36 = arith.extui %32 : i1 to i32
    %c0_i32_15 = arith.constant 0 : i32
    %37 = arith.cmpi ne, %36, %c0_i32_15 : i32
    scf.if %37 {
      %41 = tpu.iota {dimensions = array<i32: 1>} : vector<8x256xi32>
      %c0_17 = arith.constant 0 : index
      %c0_18 = arith.constant 0 : index
      %42 = vector.load %arg5[%c0_17, %c0_18] : memref<8x256xf32, #tpu.memory_space<vmem>>, vector<8x256xf32>
      %c1000_i32_19 = arith.constant 1000 : i32
      %43 = arith.subi %c1000_i32_19, %30 : i32
      %44 = vector.broadcast %43 : i32 to vector<8x256xi32>
      %45 = arith.cmpi slt, %41, %44 : vector<8x256xi32>
      %cst_20 = arith.constant 0.000000e+00 : f32
      %46 = vector.broadcast %cst_20 : f32 to vector<8x256xf32>
      %47 = arith.select %45, %27, %46 : vector<8x256xi1>, vector<8x256xf32>
      %48 = arith.addf %42, %47 : vector<8x256xf32>
      %c0_21 = arith.constant 0 : index
      %c0_22 = arith.constant 0 : index
      %49 = vector.load %arg5[%c0_21, %c0_22] : memref<8x256xf32, #tpu.memory_space<vmem>>, vector<8x256xf32>
      tpu.vector_store %arg5[%c0_21, %c0_22], %48 {strides = array<i32>} : memref<8x256xf32, #tpu.memory_space<vmem>>, vector<8x256xf32>,
    } else {
    }
    %c1_i32 = arith.constant 1 : i32
    %38 = arith.cmpi eq, %arg1, %c1_i32 : i32
    %39 = arith.extui %38 : i1 to i32
    %c0_i32_16 = arith.constant 0 : i32
    %40 = arith.cmpi ne, %39, %c0_i32_16 : i32
    scf.if %40 {
      %c0_17 = arith.constant 0 : index
      %c0_18 = arith.constant 0 : index
      %41 = vector.load %arg5[%c0_17, %c0_18] : memref<8x256xf32, #tpu.memory_space<vmem>>, vector<8x256xf32>
      %42 = vector.shape_cast %41 : vector<8x256xf32> to vector<1x8x256xf32>
      %cst_19 = arith.constant dense<0.000000e+00> : vector<1xf32>
      %43 = vector.multi_reduction <add>, %42, %cst_19 [1, 2] : vector<1x8x256xf32> to vector<1xf32>
      %44 = vector.shape_cast %43 : vector<1xf32> to vector<1x1x1xf32>
      %45 = vector.extract %44[0, 0, 0] : f32 from vector<1x1x1xf32>
      %cst_20 = arith.constant 0.000000e+00 : f32
      %46 = vector.broadcast %cst_20 : f32 to vector<1x8x128xf32>
      %47 = vector.broadcast %45 : f32 to vector<1x8x128xf32>
      %48 = arith.addf %47, %46 : vector<1x8x128xf32>
      %c0_21 = arith.constant 0 : index
      %c0_22 = arith.constant 0 : index
      %c0_23 = arith.constant 0 : index
      %49 = vector.load %arg4[%c0_21, %c0_22, %c0_23] : memref<1x8x128xf32, #tpu.memory_space<vmem>>, vector<1x8x128xf32>
      tpu.vector_store %arg4[%c0_21, %c0_22, %c0_23], %48 {strides = array<i32>} : memref<1x8x128xf32, #tpu.memory_space<vmem>>, vector<1x8x128xf32>,
    } else {
    }
    return
  }
  func.func @transform_0(%arg0: i32, %arg1: i32) -> (i32, i32, i32) {
    %c2_i32 = arith.constant 2 : i32
    %0 = arith.muli %arg0, %c2_i32 : i32
    %1 = arith.addi %0, %arg1 : i32
    %c3_i32 = arith.constant 3 : i32
    %2 = arith.minsi %1, %c3_i32 : i32
    %c0_i32 = arith.constant 0 : i32
    %c0_i32_0 = arith.constant 0 : i32
    %c0_i32_1 = arith.constant 0 : i32
    return %c0_i32, %c0_i32_0, %2 : i32, i32, i32
  }
  func.func @transform_1(%arg0: i32, %arg1: i32) -> (i32, i32, i32) {
    %c2_i32 = arith.constant 2 : i32
    %0 = arith.muli %arg0, %c2_i32 : i32
    %1 = arith.addi %0, %arg1 : i32
    %c3_i32 = arith.constant 3 : i32
    %2 = arith.minsi %1, %c3_i32 : i32
    %c0_i32 = arith.constant 0 : i32
    %c0_i32_0 = arith.constant 0 : i32
    %c0_i32_1 = arith.constant 0 : i32
    return %c0_i32, %c0_i32_0, %2 : i32, i32, i32
  }
  func.func @transform_2(%arg0: i32, %arg1: i32) -> (i32, i32, i32) {
    %c0_i32 = arith.constant 0 : i32
    %c0_i32_0 = arith.constant 0 : i32
    %c0_i32_1 = arith.constant 0 : i32
    return %arg0, %c0_i32, %c0_i32_0 : i32, i32, i32
  }
}

</mosaic_0001>

<bundles_post_ra>
// kernel: tpu_custom_call.1
= control target key start
LH: loop header
LB: loop body
LE: loop exit
PB: predicated region body
PF: predicated region fallthrough
CT: control target
= control target key end

     0   :  { %s1061_s0 = inlined_call_operand.hbm [shape: f32[2,1,1000], index: 0, kind: input, shape index: {}]   ;;  %s1062_s1 = inlined_call_operand.hbm [shape: f32[2,8,1000], index: 1, kind: input, shape index: {}]   ;;  %s1063_s2 = inlined_call_operand.hbm [shape: f32[2,8,128], index: 2, kind: output, shape index: {}]  }
   0x1   :  { %1071 = sst [smem:[#allocation21_spill]] %s1061_s0 }
   0x2   :  { %7 = vsyncpa [#allocation4], 0 }
   0x3   :  { %9 = vsyncpa [#allocation4 + $0x1], 0 }
   0x4   :  { %10 = vsyncpa [#allocation7], 0 }
   0x5   :  { %12 = vsyncpa [#allocation7 + $0x1], 0 }
   0x6   :  { %13 = vsyncpa [#allocation5], 0 }
   0x7   :  { %15 = vsyncpa [#allocation5 + $0x1], 0  ;;  %s834_s9 = smov 0   ;;  %s836_s10 = smov 0  }
   0x8   :  { %s838_s11 = smov 0   ;;  %s840_s12 = smov 0  }
   0x9   :  { %s842_s13 = smov 0   ;;  %s844_s14 = smov 0  }
   0xa   :  { %s846_s15 = smov 0   ;;  %s848_s16 = smov 0  }
   0xb   :  { %s850_s17 = smov 0   ;;  %s852_s18 = smov 0  }
   0xc   :  { %s854_s19 = smov 0  }
   0xd LB: > { %1072 = sst [smem:[#allocation12_spill]] %s778_s11  ;;  %s471_s20 = sadd.s32 4294967295, %s810_s19   ;;  %s810_s19 = sphi %s854_s19, %s21_s19   ;;  %s806_s18 = sphi %s852_s18, %s1095_s18   ;;  %s802_s17 = sphi %s850_s17, %s1094_s17   ;;  %s798_s16 = sphi %s848_s16, %s1093_s16   ;;  %s794_s15 = sphi %s846_s15, %s1092_s15   ;;  %s790_s14 = sphi %s844_s14, %s1100_s14   ;;  %s786_s13 = sphi %s842_s13, %s1099_s13   ;;  %s782_s12 = sphi %s840_s12, %s1098_s12   ;;  %s778_s11 = sphi %s838_s11, %s1089_s11   ;;  %s774_s10 = sphi %s836_s10, %s1097_s10   ;;  %s770_s9 = sphi %s834_s9, %s1096_s9  }
   0xe   : > { %1073 = sst [smem:[#allocation13_spill]] %s790_s14  ;;  %s472_s21 = sadd.s32 4294967294, %s810_s19  }
   0xf   : > { %1074 = sst [smem:[#allocation14_spill]] %s802_s17  ;;  %s30_s22 = sadd.s32 1, %s802_s17 }
  0x10   : > { %1075 = sst [smem:[#allocation15_spill]] %s806_s18  ;;  %s33_s23 = sadd.s32 1, %s806_s18 }
  0x11   : > { %p31_p0 = scmp.ge.s32.totalorder %s30_s22, 2  ;;  %s473_s24 = sshll.u32 %s806_s18, 1 }
  0x12   : > { %s38_s25 = sadd.s32 %s802_s17, %s473_s24  ;;  %s48_s26 = sadd.s32 1, %s790_s14 }
  0x13   : > { %s1102_s22 = smov (%p31_p0, %s30_s22), 0  ;;  %s1104_s23 = smov (!%p31_p0, %s33_s23), %s806_s18 }
  0x14   : > { %1076 = sst [smem:[#allocation16_spill]] %s1102_s22  ;;  %p39_p1 = scmp.lt.s32.totalorder %s38_s25, 3 }
  0x15   : > { %p55_p2 = scmp.ne.s32.totalorder %s790_s14, %s786_s13  ;;  %p35_p3 = scmp.ge.s32.totalorder %s1104_s23, 2 }
  0x16   : > { %p56_p4 = scmp.eq.s32.totalorder %s810_s19, 0  ;;  %s1106_s25 = smov (!%p39_p1, %s38_s25), 3 }
  0x17   : > { %s1108_s23 = smov (%p35_p3, %s1104_s23), 0  ;;  %p61_p6 = scmp.ne.s32.totalorder %s786_s13, %s782_s12 }
  0x18   : > { %1077 = sst [smem:[#allocation17_spill]] %s1108_s23  ;;  %p906_p5 = por %p56_p4, %p55_p2 }
  0x19   : > { %s474_s28 = sshll.u32 %s1108_s23, 1  ;;  %p62_p7 = scmp.eq.s32.totalorder %s471_s20, 0 }
  0x1a   : > { %s42_s29 = sadd.s32 %s474_s28, %s1102_s22  ;;  %s105_s30 = ssub.s32 %s806_s18, %s1108_s23 }
  0x1b   : > { %p43_p8 = scmp.lt.s32.totalorder %s42_s29, 3  ;;  %p918_p9 = por %p62_p7, %p61_p6 }
  0x1c   : > { %p106_p10 = scmp.eq.s32.totalorder %s105_s30, 0  ;;  %s108_s4 = sadd.s32 1, %s778_s11 }
  0x1d   : > { %s1110_s29 = smov (!%p43_p8, %s42_s29), 3  ;;  %p118_p11 = scmp.ne.s32.totalorder %s778_s11, %s774_s10 }
  0x1e   : > { %s924_s5 = scalar_select %p106_p10, %s778_s11, %s108_s4  }
  0x1f   : > { %s45_s6 = ssub.s32 %s1106_s25, %s1110_s29  ;;  %p119_p13 = scmp.eq.s32.totalorder %s471_s20, 3 }
  0x20   : > { %1080 = sst [smem:[#allocation18_spill]] %s924_s5  ;;  %p46_p12 = scmp.eq.s32.totalorder %s45_s6, 0 }
  0x21   : > { %p124_p0 = scmp.ne.s32.totalorder %s774_s10, %s770_s9  ;;  %p125_p1 = scmp.eq.s32.totalorder %s472_s21, 3 }
  0x22   : > { %s936_s7 = scalar_select %p46_p12, %s790_s14, %s48_s26  }
  0x23   : > { %p938_p2 = por %p119_p13, %p118_p11  ;;  %p942_p3 = por %p125_p1, %p124_p0 }
  0x24   : > { %1081 = sst [smem:[#allocation19_spill]] %s936_s7  ;;  %p523_p4 = scmp.lt.s32.totalorder %s810_s19, 4 }
  0x25   : > { %s1083_s12 = scalar_select %p942_p3, 1, 0 }
  0x26   : > { %s948_s24 = sand.u32 1, %s790_s14   ;;  %s481_s20 = sshll.u32 %s1106_s25, 1 }
  0x27   : > { %1084 = sst [smem:[#allocation20_spill]] %s1083_s12  ;;  %s479_s28 = sshll.u32 %s948_s24, 2 }
  0x28   : > { %s1085_s0 = sld [smem:[#allocation21_spill]]  ;;  %s149_s4 = scalar_lea.vmem [#allocation3], %s479_s28 }
  0x29   : > { %s160_s6 = sshll.u32 %s149_s4, 4  ;;  %p957_p6 = pnand %p523_p4, %p906_p5  ;;  %s161_s6 = int_to_ptr.vmem [resolvable:$true] %s160_s6 }
  0x2a   : > { %p486_p7 = scmp.ge.s32.totalorder %s810_s19, 1  ;;  %s146_s22 = scalar_lea.sflag [#allocation4], %s948_s24 }
  0x2b   : > { %s812_s18 = smov 128   ;;  %s813_s17 = smov 32  }
  0x2c   : > { %s814_s7 = smov 2   ;;  %p194_p8 = scmp.lt.s32.totalorder %s810_s19, 5 }
  0x2d   : > { %s503_s28 = sshll.u32 %s1106_s25, 4  ;;  %s171_s14 = scalar_lea.sflag [#allocation7], %s948_s24 }
  0x2e   : > { %s157_s29 = scalar_lea.hbm %s1085_s0, %s481_s20  ;;  %s482_s20 = sshll.u32 %s948_s24, 5 }
  0x2f   : > { %s158_s30 = sshll.u32 %s157_s29, 4  ;;  %p195_p10 = pnand %p486_p7, %p194_p8  ;;  %s159_s30 = int_to_ptr.hbm [resolvable:$true] %s158_s30 }
  0x30   : > { %515 = dma.hbm_to_vmem [thread:$0]  (!%p957_p6), %s159_s30, 64, %s161_s6, %s146_s22, %s812_s18, %s813_s17, %s814_s7  }
  0x31   : > { %s183_s26 = scalar_lea.hbm %s1062_s1, %s503_s28  ;;  %s174_s29 = scalar_lea.vmem [#allocation6], %s482_s20 }
  0x32   : > { %s186_s4 = sshll.u32 %s174_s29, 4  ;;  %s184_s0 = sshll.u32 %s183_s26, 4  ;;  %s187_s4 = int_to_ptr.vmem [resolvable:$true] %s186_s4  ;;  %s185_s0 = int_to_ptr.hbm [resolvable:$true] %s184_s0 }
  0x33   : > { %s815_s5 = smov 1024   ;;  %s816_s11 = smov 256  }
  0x34   : > { %s817_s12 = smov 16   ;;  %198 = sbr.rel (%p195_p10) target bundleno = 329 (0x149), region = 28 }
  0x35   : > { %518 = dma.hbm_to_vmem [thread:$0]  (!%p957_p6), %s185_s0, 512, %s187_s4, %s171_s14, %s815_s5, %s816_s11, %s817_s12  }
  0x36   : > { %s200_s17 = sand.u32 (!%p195_p10), 1, %s786_s13  }
  0x37   : > { %s487_s18 = sshll.u32 (!%p195_p10), %s200_s17, 2  ;;  %s201_s22 = scalar_lea.sflag (!%p195_p10), [#allocation4], %s200_s17 }
  0x38   : > { %s204_s25 = scalar_lea.vmem (!%p195_p10), [#allocation3], %s487_s18 }
  0x39   : > { %757 = dma.done.wait (%p918_p9), %s201_s22, 64  }
  0x3a   : > { %759 = vsyncadd (%p918_p9), %s201_s22, 4294967232  ;;  %s488_s7 = sshll.u32 %s200_s17, 5  ;;  %s211_s24 = scalar_lea.sflag [#allocation7], %s200_s17 }
  0x3b   : > { %s214_s30 = scalar_lea.vmem [#allocation6], %s488_s7 }
  0x3c   : > { %761 = dma.done.wait (%p918_p9), %s211_s24, 512  }
  0x3d   : > { %763 = vsyncadd (%p918_p9), %s211_s24, 4294966784  ;;  %s238_s0 = sand.u32 1, %s774_s10   ;;  %p490_p5 = scmp.ne.s32.totalorder %s794_s15, 0 }
  0x3e   : > { %s986_s11 = sshll.u32 %s238_s0, 3 }
  0x3f   : > { %s240_s14 = scalar_lea.vmem [#allocation8], %s986_s11  ;;  %254 = sbr.rel (%p490_p5) target bundleno = 71 (0x47), region = 40 }
  0x44   : > { %v818_v0 = vmov 0.0  }
  0x45   : > { %255 = vst [vmem:[#allocation2] sm:$0xff] %v818_v0 }
  0x46   : > { %256 = vst [vmem:[#allocation2 + $0x8] sm:$0xff] %v818_v0 }
  0x47 PF: > { %v257_v1 = vld [vmem:[%s214_s30] sm:$0xff]  ;;  %v258_v2 = vld [vmem:[%s214_s30 + $0x8] sm:$0xff]  ;;  %v259_v3 = vld [vmem:[%s204_s25] sm:$0x3]  ;;  %s494_s23 = sshll.u32 %s798_s16, 1 }
  0x48   : > { %v261_v4 = vperm.slane %v259_v3, 0  ;;  %v262_v5 = vperm.slane %v259_v3, 1  ;;  %v491_v6 = vld [vmem:[%s214_s30 + $0x10] sm:$0xff]  ;;  %v492_v7 = vld [vmem:[%s214_s30 + $0x18] sm:$0xff]  ;;  %s992_s3 = sadd.s32 %s794_s15, %s494_s23 }
  0x49   : > { %v493_v8 = vld [vmem:[%s204_s25 + $0x2] sm:$0x3]  ;;  %s495_s5 = sshll.u32 %s992_s3, 8 }
  0x4a   : > { %v275_v9 = vperm.slane %v493_v8, 0  ;;  %v276_v10 = vperm.slane %v493_v8, 1  ;;  %v265_v11 = vsub.f32 %v257_v1, %v261_v4  ;;  %v266_v12 = vsub.f32 %v258_v2, %v262_v5  ;;  %s997_s12 = sadd.s32 256, %s495_s5 }
  0x4b   : > { %p496_p9 = scmp.gt.s32.totalorder %s997_s12, 1000 }
  0x4c   : > { %v279_v13 = vsub.f32 %v491_v6, %v275_v9  ;;  %v280_v14 = vsub.f32 %v492_v7, %v276_v10  ;;  %v267_v15 = vmul.f32 %v265_v11, %v265_v11  ;;  %v268_v16 = vmul.f32 %v266_v12, %v266_v12 }
  0x4e   : > { %v281_v17 = vmul.f32 %v279_v13, %v279_v13  ;;  %v282_v18 = vmul.f32 %v280_v14, %v280_v14 }
  0x50   : > { %v283_v19 = vadd.f32 %v281_v17, %v267_v15  ;;  %v284_v20 = vadd.f32 %v282_v18, %v268_v16 }
  0x52   : > { %v285_v21 = vadd.f32 1.0, %v283_v19  ;;  %v286_v22 = vadd.f32 1.0, %v284_v20 }
  0x54   : > { %v287_v23 = vadd.f32 10000.0, %v285_v21  ;;  %v288_v24 = vadd.f32 10000.0, %v286_v22 }
  0x56   : > { %620 = vrcp.f32 %v287_v23 }
  0x57   : > { %622 = vrcp.f32 %v288_v24 }
  0x5c   : > { %v621_v25 = vpop.eup %620 }
  0x5d   : > { %v623_v26 = vpop.eup %622  ;;  %v291_v27 = vmul.f32 %v621_v25, %v287_v23 }
  0x5e   : > { %v292_v28 = vmul.f32 %v623_v26, %v288_v24 }
  0x5f   : > { %v293_v29 = vsub.f32 2.0, %v291_v27 }
  0x60   : > { %v294_v30 = vsub.f32 2.0, %v292_v28  ;;  %307 = sbr.rel (%p496_p9) target bundleno = 106 (0x6a), region = 44 }
  0x61   : > { %v295_v31 = vmul.f32 %v621_v25, %v293_v29 }
  0x62   : > { %v296_v32 = vmul.f32 %v623_v26, %v294_v30 }
  0x63   : > { %v297_v33 = vmul.f32 %v295_v31, %v285_v21 }
  0x64   : > { %v298_v34 = vmul.f32 %v296_v32, %v286_v22 }
  0x65   : > { %v308_v35 = vld [vmem:[#allocation2] sm:$0xff]  ;;  %v309_v36 = vld [vmem:[#allocation2 + $0x8] sm:$0xff] }
  0x66   : > { %v310_v37 = vadd.f32 %v308_v35, %v297_v33  ;;  %v311_v38 = vadd.f32 %v309_v36, %v298_v34 }
  0x68   : > { %312 = vst [vmem:[#allocation2] sm:$0xff] %v310_v37 }
  0x69   : > { %313 = vst [vmem:[#allocation2 + $0x8] sm:$0xff] %v311_v38 }
  0x6a PF: > { %p497_p11 = scmp.le.s32.totalorder %s997_s12, 1000 }
  0x6b   : > { %s322_s6 = ssub.s32 (!%p497_p11), 1000, %s495_s5 }
  0x6c   : > { %316 = sbr.rel (%p497_p11) target bundleno = 124 (0x7c), region = 48 }
  0x71   : > { %v317_v39 = vlaneseq  ;;  %v323_v40 = vstv %s322_s6  ;;  %v320_v42 = vld [vmem:[#allocation2] sm:$0xff]  ;;  %v321_v45 = vld [vmem:[#allocation2 + $0x8] sm:$0xff] }
  0x73   : > { %v318_v41 = vand.u32 127, %v317_v39 }
  0x75   : > { %vm324_vm0 = vcmp.lt.s32.totalorder %v318_v41, %v323_v40  ;;  %v319_v43 = vadd.s32 128, %v318_v41 }
  0x76   : > { %v326_v44 = vsel %vm324_vm0, %v297_v33, 0.0 }
  0x77   : > { %v328_v46 = vadd.f32 %v326_v44, %v320_v42  ;;  %vm325_vm1 = vcmp.lt.s32.totalorder %v319_v43, %v323_v40 }
  0x78   : > { %v327_v47 = vsel %vm325_vm1, %v298_v34, 0.0 }
  0x79   : > { %330 = vst [vmem:[#allocation2] sm:$0xff] %v328_v46  ;;  %v329_v48 = vadd.f32 %v327_v47, %v321_v45 }
  0x7b   : > { %331 = vst [vmem:[#allocation2 + $0x8] sm:$0xff] %v329_v48 }
  0x7c PF: > { %p498_p12 = scmp.ne.s32.totalorder %s794_s15, 1 }
  0x7e   : > { %335 = sbr.rel (%p498_p12) target bundleno = 314 (0x13a), region = 52 }
  0x83   : > { %v336_v49 = vld [vmem:[#allocation2] sm:$0xff]  ;;  %v337_v50 = vld [vmem:[#allocation2 + $0x8] sm:$0xff] }
  0x84   : > { %v338_v51 = vadd.f32 %v337_v50, %v336_v49 }
  0x86   : > { %339 = vadd.xlane.f32.xlu0 %v338_v51 }
  0xf9   : > { %v340_v52 = vpop.xlane.xlu0 %339 }
  0xfa   : > { %v341_v53 = vrot.slane %v340_v52, 4 }
  0xfc   : > { %v342_v54 = vadd.f32 %v341_v53, %v340_v52 }
  0xfe   : > { %v343_v55 = vrot.slane %v342_v54, 2 }
 0x100   : > { %v344_v56 = vadd.f32 %v343_v55, %v342_v54 }
 0x102   : > { %v345_v57 = vrot.slane %v344_v56, 1 }
 0x104   : > { %v346_v58 = vadd.f32 %v345_v57, %v344_v56 }
 0x106   : > { %504 = vpush %v346_v58 }
 0x137   : > { %s505_s20 = spop %504 }
 0x138   : > { %v348_v59 = vstv %s505_s20 }
 0x139   : > { %350 = vst [vmem:[%s240_s14] sm:$0xff] %v348_v59 }
 0x13a PF: > { %s500_s15 = sshll.u32 %s798_s16, 3  ;;  %s364_s26 = sshll.u32 %s240_s14, 4  ;;  %s365_s26 = int_to_ptr.vmem [resolvable:$true] %s364_s26 }
 0x13b   : > { %s362_s27 = scalar_lea.hbm %s1063_s2, %s500_s15  ;;  %s352_s4 = scalar_lea.sflag [#allocation5], %s238_s0 }
 0x13c   : > { %s366_s29 = sshll.u32 %s362_s27, 4  ;;  %s704_s25 = scalar_lea.hbm %s1063_s2, 16  ;;  %s367_s29 = int_to_ptr.hbm [resolvable:$true] %s366_s29 }
 0x13d   : > { %s698_s17 = sshra.s32 %s367_s29, 4  ;;  %s699_s17 = int_to_ptr.hbm [resolvable:$true] %s698_s17 }
 0x13e   : > { %s700_s18 = scalar_lea.hbm %s699_s17, 8  ;;  %p705_p4 = scmp.lt.s32.totalorder %s699_s17, %s1063_s2 }
 0x13f   : > { %p701_p13 = scmp.ne.s32.totalorder %s699_s17, %s700_s18  ;;  %p706_p6 = scmp.lt.s32.totalorder %s704_s25, %s700_s18 }
 0x141   : > { %p702_p0 = pnand %p701_p13, %p938_p2  ;;  %p707_p7 = por %p706_p6, %p705_p4 }
 0x143   : > { %p703_p1 = pneg %p702_p0 }
 0x145   : > { %p708_p8 = pnand %p707_p7, %p703_p1 }
 0x147   : > { %711 = shalt.err (!%p708_p8)
}
 0x148   : > { %510 = dma.vmem_to_hbm [thread:$0]  (%p938_p2), %s365_s26, 128, %s367_s29, %s352_s4  }
 0x149 PF: > { %p524_p10 = scmp.ge.s32.totalorder %s810_s19, 2  ;;  %s378_s0 = sand.u32 1, %s770_s9  }
 0x14a   : > { %s379_s11 = scalar_lea.sflag [#allocation5], %s378_s0 }
 0x14b   : > { %p520_p5 = pnand %p524_p10, %p942_p3 }
 0x14d   : > { %p521_p9 = pneg %p520_p5 }
 0x14f   : > { %765 = dma.done.wait (%p521_p9), %s379_s11, 128  }
 0x150   : > { %767 = vsyncadd (%p521_p9), %s379_s11, 4294967168  ;;  %s21_s19 = sadd.s32 1, %s810_s19   ;;  %s1088_s14 = sld [smem:[#allocation12_spill]] }
 0x151   : > { %p18_p11 = scmp.ge.s32.totalorder %s21_s19, 6   ;;  %s1089_s11 = sld [smem:[#allocation18_spill]] }
 0x152   : > { %s1090_s8 = sld [smem:[#allocation13_spill]]  ;;  %s1096_s9 = smov %s774_s10 }
 0x153   : > { %s1091_s23 = sld [smem:[#allocation19_spill]]  ;;  %s1098_s12 = smov %s786_s13 }
 0x154   : > { %s1092_s15 = sld [smem:[#allocation14_spill]] }
 0x155   : > { %s1093_s16 = sld [smem:[#allocation15_spill]]  ;;  %20 = sbr.rel (!%p18_p11) target bundleno = 13 (0xd), region = 104 }
 0x156   : > { %s1094_s17 = sld [smem:[#allocation16_spill]]  ;;  %s1097_s10 = smov %s1088_s14 }
 0x157   : > { %s1095_s18 = sld [smem:[#allocation17_spill]] }
 0x158   : > { %s1099_s13 = smov %s1090_s8 }
 0x159   : > { %s1100_s14 = smov %s1091_s23 }
 0x15a   :  { %385 = vsyncpa [#allocation4], 1 }
 0x15b   :  { %387 = vsyncpa [#allocation4 + $0x1], 1 }
 0x15c   :  { %388 = vsyncpa [#allocation7], 1 }
 0x15d   :  { %390 = vsyncpa [#allocation7 + $0x1], 1 }
 0x15e   :  { %391 = vsyncpa [#allocation5], 1 }
 0x15f   :  { %393 = vsyncpa [#allocation5 + $0x1], 1 }

</bundles_post_ra>
